<compile_context>
chip_gen: v7x
topology: tpu7x:2x2x1
jax: 0.10.0
libtpu: 0.0.40
codegen_flags: <defaults>
</compile_context>

<pallas_src>
import jax
import jax.numpy as jnp
from jax.experimental import pallas as pl
from jax.experimental.pallas import tpu as pltpu


# ----------------------------------------------------------------------------- kernel
def _make_kernel(num_label_groups: int, num_feature_groups: int):
    """Kernel body for a fixed (static) number of cond groups."""
    has_labels = num_label_groups > 0
    has_feats = num_feature_groups > 0

    def kernel(*refs):
        idx = 0
        labels_ref = None
        if has_labels:
            labels_ref = refs[idx]
            idx += 1
        feat_refs = []
        for _ in range(num_feature_groups):
            feat_refs.append(refs[idx:idx + 3])          # (feat, w1, b1)
            idx += 3
        wbig_ref = refs[idx]                             # [n_pad + n_feat*D, D] bf16
        idx += 1
        b2sum_ref = None
        if has_feats:
            b2sum_ref = refs[idx]
            idx += 1
        out_ref = refs[idx]

        tb, D = out_ref.shape
        lhs_parts = []

        # ---- discrete-label branch: OR-multi-hot over the 128-padded class axis ----
        if has_labels:
            n_pad = wbig_ref.shape[0] - num_feature_groups * D
            labels = labels_ref[...]                                  # [tb, G_l] int32 (offset-shifted)
            class_iota = jax.lax.broadcasted_iota(jnp.int32, (tb, n_pad), 1)
            hit = class_iota == labels[:, 0:1]
            for g in range(1, num_label_groups):
                # group offsets make per-group matches disjoint -> OR == sum
                hit = jnp.logical_or(hit, class_iota == labels[:, g:g + 1])
            lhs_parts.append(hit.astype(jnp.bfloat16))                # [tb, n_pad]

        # ---- feature branches: first Linear + SiLU (second Linear fused below) ----
        for feat_ref, w1_ref, b1_ref in feat_refs:
            h = jnp.dot(feat_ref[...], w1_ref[...],                    # bf16 x bf16
                        preferred_element_type=jnp.float32) + b1_ref[...]
            h = h * jax.nn.sigmoid(h)                                  # SiLU (f32, EUP)
            lhs_parts.append(h.astype(jnp.bfloat16))                   # [tb, D]

        # ---- ONE large-K MXU matmul: [multihot, h_1, ..] @ [tables; W2_1; ..] ----
        lhs = lhs_parts[0] if len(lhs_parts) == 1 else jnp.concatenate(lhs_parts, axis=-1)
        acc = jnp.dot(lhs, wbig_ref[...], preferred_element_type=jnp.float32)
        if has_feats:
            acc = acc + b2sum_ref[...]                                 # pre-summed b2's
        out_ref[...] = acc.astype(out_ref.dtype)

    return kernel


# ----------------------------------------------------------------------------- helpers
def _tensorcores_per_chip() -> int:
    """Heuristic TC count for tile selection (v7x has 2 TCs/chip)."""
    try:
        kind = jax.devices()[0].device_kind.lower()
    except Exception:
        return 1
    return 2 if "v7" in kind else 1


def _resident_spec(shape):
    """BlockSpec for a parameter whose block index never changes across the grid."""
    try:
        return pl.BlockSpec(shape, lambda i: (0, 0), pipeline_mode=pl.Buffered(1))
    except Exception:  # older jax without pipeline_mode / Buffered(1)
        return pl.BlockSpec(shape, lambda i: (0, 0))


def _pick_tb(B: int, align: int, num_tc: int, cap: int = 512) -> int:
    """Largest aligned batch tile <= cap dividing B; keep >=num_tc steps on multi-TC."""
    cands = [t for t in range(align, min(B, cap) + 1, align) if B % t == 0]
    if not cands:
        return B                       # full-extent block: always layout-legal, grid=(1,)
    if num_tc > 1:
        multi = [t for t in cands if B // t >= num_tc]
        if multi:                      # leave work for both TensorCores (v7x)
            return multi[-1]
    return cands[-1]                   # single TC: fewest, fattest steps


# ----------------------------------------------------------------------------- wrapper
def cond_embedder(labels_list, tables_list, features_list, mlp_params_list,
                  *, block_b=None, out_dtype=jnp.float32):
    """Fused CondEmbedder forward.

    labels_list     : list of int32 [B] class-index arrays (one per DiscreteLabel).
    tables_list     : list of [num_classes_g, D] embedding tables.
    features_list   : list of [B, F_g] feature tensors.
    mlp_params_list : list of (w1 [F_g, D], b1 [D], w2 [D, D], b2 [D]).
    """
    n_label = len(labels_list)
    n_feat = len(features_list)
    assert n_label == len(tables_list) and n_feat == len(mlp_params_list)
    assert n_label + n_feat > 0, "cond should not be None"

    if n_label:
        B = labels_list[0].shape[0]
        D = tables_list[0].shape[1]
    else:
        B = features_list[0].shape[0]
        D = mlp_params_list[0][0].shape[1]
    assert D % 128 == 0, "embed_features should be a multiple of 128 (lane-dense output)"

    # Batch tile: bf16 feature tiles want 16-row alignment, int32/f32 want 8.
    align = 16 if n_feat else 8
    tb = _pick_tb(B, align, _tensorcores_per_chip()) if block_b is None else min(block_b, B)
    assert B % tb == 0, "batch must tile evenly into blocks"
    assert tb == B or tb % align == 0, "batch tile must be align-multiple (16 for bf16 tiles)"

    out_itemsize = jnp.dtype(out_dtype).itemsize

    inputs = []
    in_specs = []
    wbig_rows = []                     # rows of the fused [tables; W2_1; ...; W2_n] matrix
    flops = 0
    transcendentals = 0
    tile_bytes = tb * D * out_itemsize          # per-step output tile
    resident_bytes = 0

    n_pad = 0
    if n_label:
        # Concatenate all tables along the class axis and shift each group's labels
        # by its row offset -> shifted labels are disjoint across groups, so one
        # OR-multi-hot matmul computes the sum over all label groups.
        offsets, off = [], 0
        for t in tables_list:
            offsets.append(off)
            off += t.shape[0]
        n_total = off
        n_pad = max(128, ((n_total + 127) // 128) * 128)   # lane-dense class axis (K dim)
        table_cat = jnp.zeros((n_pad, D), jnp.bfloat16).at[:n_total].set(
            jnp.concatenate([t.astype(jnp.bfloat16) for t in tables_list], axis=0))
        wbig_rows.append(table_cat)
        # NOTE: out-of-range / negative labels silently produce a zero embedding
        # (unlike torch gather, which errors); inputs are assumed valid.
        labels_all = jnp.stack(
            [lab.reshape(B).astype(jnp.int32) + o
             for lab, o in zip(labels_list, offsets)], axis=1)          # [B, G_l]
        inputs.append(labels_all)
        in_specs.append(pl.BlockSpec((tb, n_label), lambda i: (i, 0)))  # batch-tiled
        tile_bytes += tb * n_label * 4
        flops += 2 * B * n_pad * D

    b2_sum = None
    for feat, (w1, b1, w2, b2) in zip(features_list, mlp_params_list):
        F = feat.shape[1]
        inputs += [feat.astype(jnp.bfloat16),
                   w1.astype(jnp.bfloat16),
                   b1.reshape(1, D).astype(jnp.float32)]
        in_specs += [pl.BlockSpec((tb, F), lambda i: (i, 0)),   # batch-tiled features
                     _resident_spec((F, D)),                    # resident W1 (Buffered(1))
                     _resident_spec((1, D))]                    # resident b1
        wbig_rows.append(w2.astype(jnp.bfloat16))
        b2_sum = b2.astype(jnp.float32) if b2_sum is None else b2_sum + b2.astype(jnp.float32)
        tile_bytes += tb * F * 2
        resident_bytes += F * D * 2 + D * 4
        flops += 2 * B * F * D + 2 * B * D * D
        transcendentals += B * D                                # sigmoid in SiLU

    # Fused right-hand matrix: [table_cat; W2_1; ...; W2_n]  (K_big, D) bf16, resident.
    wbig = wbig_rows[0] if len(wbig_rows) == 1 else jnp.concatenate(wbig_rows, axis=0)
    k_big = n_pad + n_feat * D
    inputs.append(wbig)
    in_specs.append(_resident_spec((k_big, D)))
    resident_bytes += k_big * D * 2
    if n_feat:
        inputs.append(b2_sum.reshape(1, D))
        in_specs.append(_resident_spec((1, D)))
        resident_bytes += D * 4

    bytes_accessed = int(sum(int(x.size) * x.dtype.itemsize for x in inputs)
                         + B * D * out_itemsize)

    # Scoped-VMEM budget: single-buffered resident params, double-buffered
    # batch/output tiles, plus in-kernel intermediates, with ~2x headroom.
    scratch_bytes = tb * k_big * 2 + 3 * tb * D * 4 + (tb * n_pad * 4 if n_label else 0)
    vmem_need = resident_bytes + 2 * tile_bytes + scratch_bytes
    vmem_limit = int(min(max(2 * vmem_need, 32 << 20), 64 << 20))

    kernel = _make_kernel(n_label, n_feat)
    return pl.pallas_call(
        kernel,
        out_shape=jax.ShapeDtypeStruct((B, D), out_dtype),
        grid_spec=pltpu.PrefetchScalarGridSpec(
            num_scalar_prefetch=0,
            grid=(B // tb,),
            in_specs=in_specs,
            out_specs=pl.BlockSpec((tb, D), lambda i: (i, 0)),
        ),
        compiler_params=pltpu.CompilerParams(
            dimension_semantics=("parallel",),          # megacore sharding on v7x
            vmem_limit_bytes=vmem_limit),
        cost_estimate=pl.CostEstimate(flops=flops,
                                      transcendentals=transcendentals,
                                      bytes_accessed=bytes_accessed),
    )(*inputs)


# ----------------------------------------------------------------------------- test
if __name__ == "__main__":
    # Small but lane-friendly shapes: two DiscreteLabel groups + two feature
    # tensors, embed_features = 128 (lane-dense output).
    B = 64
    D = 128
    label_classes = [10, 16]
    feature_dims = [128, 32]

    key = jax.random.PRNGKey(0)
    keys = jax.random.split(key, 16)

    labels_list = [jax.random.randint(keys[i], (B,), 0, n, dtype=jnp.int32)
                   for i, n in enumerate(label_classes)]
    tables_list = [jax.random.normal(keys[4 + i], (n, D), dtype=jnp.float32) * 0.02
                   for i, n in enumerate(label_classes)]
    features_list = [jax.random.normal(keys[8 + i], (B, F), dtype=jnp.float32)
                     for i, F in enumerate(feature_dims)]
    mlp_params_list = []
    for i, F in enumerate(feature_dims):
        kw1, kb1, kw2, kb2 = jax.random.split(keys[12 + i], 4)
        w1 = jax.random.normal(kw1, (F, D), dtype=jnp.float32) / jnp.sqrt(F)
        b1 = jax.random.normal(kb1, (D,), dtype=jnp.float32) * 0.01
        w2 = jax.random.normal(kw2, (D, D), dtype=jnp.float32) / jnp.sqrt(D)
        b2 = jax.random.normal(kb2, (D,), dtype=jnp.float32) * 0.01
        mlp_params_list.append((w1, b1, w2, b2))

    out = cond_embedder(labels_list, tables_list, features_list, mlp_params_list)
    out = jax.block_until_ready(out)

    # Pure-JAX reference, mirroring the kernel's bf16-operand / f32-accumulate math.
    ref = jnp.zeros((B, D), jnp.float32)
    for lab, tab in zip(labels_list, tables_list):
        ref = ref + tab.astype(jnp.bfloat16)[lab].astype(jnp.float32)
    for feat, (w1, b1, w2, b2) in zip(features_list, mlp_params_list):
        h = jnp.dot(feat.astype(jnp.bfloat16), w1.astype(jnp.bfloat16),
                    preferred_element_type=jnp.float32) + b1[None, :]
        h = h * jax.nn.sigmoid(h)
        ref = ref + jnp.dot(h.astype(jnp.bfloat16), w2.astype(jnp.bfloat16),
                            preferred_element_type=jnp.float32) + b2[None, :]

    assert out.shape == (B, D)
    assert jnp.allclose(out, ref, atol=5e-3, rtol=5e-3), float(jnp.max(jnp.abs(out - ref)))

    print("KERNEL_OK")
</pallas_src>

<mosaic_0001>
module attributes {stable_mosaic.version = 11 : i64} {
  func.func @kernel(%arg0: i32, %arg1: memref<64x2xi32, #tpu.memory_space<vmem>>, %arg2: memref<64x128xbf16, #tpu.memory_space<vmem>>, %arg3: memref<128x128xbf16, #tpu.memory_space<vmem>>, %arg4: memref<1x128xf32, #tpu.memory_space<vmem>>, %arg5: memref<64x32xbf16, #tpu.memory_space<vmem>>, %arg6: memref<32x128xbf16, #tpu.memory_space<vmem>>, %arg7: memref<1x128xf32, #tpu.memory_space<vmem>>, %arg8: memref<384x128xbf16, #tpu.memory_space<vmem>>, %arg9: memref<1x128xf32, #tpu.memory_space<vmem>>, %arg10: memref<64x128xf32, #tpu.memory_space<vmem>>) attributes {dimension_semantics = [#tpu.dimension_semantics<parallel>], iteration_bounds = array<i64: 1>, scalar_prefetch = 0 : i64, scratch_operands = 0 : i64, tpu.core_type = #tpu.core_type<tc>, window_params = [{transform_indices = @transform_0, window_bounds = array<i64: 64, 2>}, {transform_indices = @transform_1, window_bounds = array<i64: 64, 128>}, {pipeline_mode = #tpu.pipeline_mode<synchronous>, transform_indices = @transform_2, window_bounds = array<i64: 128, 128>}, {pipeline_mode = #tpu.pipeline_mode<synchronous>, transform_indices = @transform_3, window_bounds = array<i64: 1, 128>}, {transform_indices = @transform_4, window_bounds = array<i64: 64, 32>}, {pipeline_mode = #tpu.pipeline_mode<synchronous>, transform_indices = @transform_5, window_bounds = array<i64: 32, 128>}, {pipeline_mode = #tpu.pipeline_mode<synchronous>, transform_indices = @transform_6, window_bounds = array<i64: 1, 128>}, {pipeline_mode = #tpu.pipeline_mode<synchronous>, transform_indices = @transform_7, window_bounds = array<i64: 384, 128>}, {pipeline_mode = #tpu.pipeline_mode<synchronous>, transform_indices = @transform_8, window_bounds = array<i64: 1, 128>}, {transform_indices = @transform_9, window_bounds = array<i64: 64, 128>}]} {
    %c0 = arith.constant 0 : index
    %c0_0 = arith.constant 0 : index
    %0 = vector.load %arg1[%c0, %c0_0] : memref<64x2xi32, #tpu.memory_space<vmem>>, vector<64x2xi32>
    %1 = tpu.iota {dimensions = array<i32: 1>} : vector<64x128xi32>
    %2 = vector.extract_strided_slice %0 {offsets = [0, 0], sizes = [64, 1], strides = [1, 1]} : vector<64x2xi32> to vector<64x1xi32>
    %3 = vector.broadcast %2 : vector<64x1xi32> to vector<64x128xi32>
    %4 = arith.cmpi eq, %1, %3 : vector<64x128xi32>
    %5 = vector.extract_strided_slice %0 {offsets = [0, 1], sizes = [64, 1], strides = [1, 1]} : vector<64x2xi32> to vector<64x1xi32>
    %6 = vector.broadcast %5 : vector<64x1xi32> to vector<64x128xi32>
    %7 = arith.cmpi eq, %1, %6 : vector<64x128xi32>
    %8 = arith.ori %4, %7 : vector<64x128xi1>
    %9 = arith.extui %8 : vector<64x128xi1> to vector<64x128xi32>
    %10 = arith.sitofp %9 : vector<64x128xi32> to vector<64x128xf32>
    %11 = arith.truncf %10 : vector<64x128xf32> to vector<64x128xbf16>
    %c0_1 = arith.constant 0 : index
    %c0_2 = arith.constant 0 : index
    %12 = vector.load %arg2[%c0_1, %c0_2] : memref<64x128xbf16, #tpu.memory_space<vmem>>, vector<64x128xbf16>
    %c0_3 = arith.constant 0 : index
    %c0_4 = arith.constant 0 : index
    %13 = vector.load %arg3[%c0_3, %c0_4] : memref<128x128xbf16, #tpu.memory_space<vmem>>, vector<128x128xbf16>
    %cst = arith.constant dense<0.000000e+00> : vector<64x128xf32>
    %14 = tpu.matmul %12, %13, %cst {dimension_numbers = #tpu.dot_dimension_numbers<[1], [0], [0], [1], [0, 0, 1, 1], [], []>} : vector<64x128xbf16>, vector<128x128xbf16>, vector<64x128xf32> -> vector<64x128xf32>
    %c0_5 = arith.constant 0 : index
    %c0_6 = arith.constant 0 : index
    %15 = vector.load %arg4[%c0_5, %c0_6] : memref<1x128xf32, #tpu.memory_space<vmem>>, vector<1x128xf32>
    %16 = vector.broadcast %15 : vector<1x128xf32> to vector<64x128xf32>
    %17 = arith.addf %14, %16 : vector<64x128xf32>
    %18 = arith.negf %17 : vector<64x128xf32>
    %19 = math.exp %18 : vector<64x128xf32>
    %cst_7 = arith.constant 1.000000e+00 : f32
    %20 = vector.broadcast %cst_7 : f32 to vector<64x128xf32>
    %21 = arith.addf %20, %19 : vector<64x128xf32>
    %22 = arith.divf %20, %21 : vector<64x128xf32>
    %23 = arith.mulf %17, %22 : vector<64x128xf32>
    %24 = arith.truncf %23 : vector<64x128xf32> to vector<64x128xbf16>
    %c0_8 = arith.constant 0 : index
    %c0_9 = arith.constant 0 : index
    %25 = vector.load %arg5[%c0_8, %c0_9] : memref<64x32xbf16, #tpu.memory_space<vmem>>, vector<64x32xbf16>
    %c0_10 = arith.constant 0 : index
    %c0_11 = arith.constant 0 : index
    %26 = vector.load %arg6[%c0_10, %c0_11] : memref<32x128xbf16, #tpu.memory_space<vmem>>, vector<32x128xbf16>
    %cst_12 = arith.constant dense<0.000000e+00> : vector<64x128xf32>
    %27 = tpu.matmul %25, %26, %cst_12 {dimension_numbers = #tpu.dot_dimension_numbers<[1], [0], [0], [1], [0, 0, 1, 1], [], []>} : vector<64x32xbf16>, vector<32x128xbf16>, vector<64x128xf32> -> vector<64x128xf32>
    %c0_13 = arith.constant 0 : index
    %c0_14 = arith.constant 0 : index
    %28 = vector.load %arg7[%c0_13, %c0_14] : memref<1x128xf32, #tpu.memory_space<vmem>>, vector<1x128xf32>
    %29 = vector.broadcast %28 : vector<1x128xf32> to vector<64x128xf32>
    %30 = arith.addf %27, %29 : vector<64x128xf32>
    %31 = arith.negf %30 : vector<64x128xf32>
    %32 = math.exp %31 : vector<64x128xf32>
    %cst_15 = arith.constant 1.000000e+00 : f32
    %33 = vector.broadcast %cst_15 : f32 to vector<64x128xf32>
    %34 = arith.addf %33, %32 : vector<64x128xf32>
    %35 = arith.divf %33, %34 : vector<64x128xf32>
    %36 = arith.mulf %30, %35 : vector<64x128xf32>
    %37 = arith.truncf %36 : vector<64x128xf32> to vector<64x128xbf16>
    %38 = tpu.concatenate %11, %24, %37 in 1 : vector<64x128xbf16>, vector<64x128xbf16>, vector<64x128xbf16> -> vector<64x384xbf16>
    %c0_16 = arith.constant 0 : index
    %c0_17 = arith.constant 0 : index
    %39 = vector.load %arg8[%c0_16, %c0_17] : memref<384x128xbf16, #tpu.memory_space<vmem>>, vector<384x128xbf16>
    %cst_18 = arith.constant dense<0.000000e+00> : vector<64x128xf32>
    %40 = tpu.matmul %38, %39, %cst_18 {dimension_numbers = #tpu.dot_dimension_numbers<[1], [0], [0], [1], [0, 0, 1, 1], [], []>} : vector<64x384xbf16>, vector<384x128xbf16>, vector<64x128xf32> -> vector<64x128xf32>
    %c0_19 = arith.constant 0 : index
    %c0_20 = arith.constant 0 : index
    %41 = vector.load %arg9[%c0_19, %c0_20] : memref<1x128xf32, #tpu.memory_space<vmem>>, vector<1x128xf32>
    %42 = vector.broadcast %41 : vector<1x128xf32> to vector<64x128xf32>
    %43 = arith.addf %40, %42 : vector<64x128xf32>
    %c0_21 = arith.constant 0 : index
    %c0_22 = arith.constant 0 : index
    %44 = vector.load %arg10[%c0_21, %c0_22] : memref<64x128xf32, #tpu.memory_space<vmem>>, vector<64x128xf32>
    tpu.vector_store %arg10[%c0_21, %c0_22], %43 {strides = array<i32>} : memref<64x128xf32, #tpu.memory_space<vmem>>, vector<64x128xf32>,
    return
  }
  func.func @transform_0(%arg0: i32) -> (i32, i32) {
    %c0_i32 = arith.constant 0 : i32
    %c0_i32_0 = arith.constant 0 : i32
    return %arg0, %c0_i32 : i32, i32
  }
  func.func @transform_1(%arg0: i32) -> (i32, i32) {
    %c0_i32 = arith.constant 0 : i32
    %c0_i32_0 = arith.constant 0 : i32
    return %arg0, %c0_i32 : i32, i32
  }
  func.func @transform_2(%arg0: i32) -> (i32, i32) {
    %c0_i32 = arith.constant 0 : i32
    %c0_i32_0 = arith.constant 0 : i32
    %c0_i32_1 = arith.constant 0 : i32
    return %c0_i32, %c0_i32_0 : i32, i32
  }
  func.func @transform_3(%arg0: i32) -> (i32, i32) {
    %c0_i32 = arith.constant 0 : i32
    %c0_i32_0 = arith.constant 0 : i32
    %c0_i32_1 = arith.constant 0 : i32
    return %c0_i32, %c0_i32_0 : i32, i32
  }
  func.func @transform_4(%arg0: i32) -> (i32, i32) {
    %c0_i32 = arith.constant 0 : i32
    %c0_i32_0 = arith.constant 0 : i32
    return %arg0, %c0_i32 : i32, i32
  }
  func.func @transform_5(%arg0: i32) -> (i32, i32) {
    %c0_i32 = arith.constant 0 : i32
    %c0_i32_0 = arith.constant 0 : i32
    %c0_i32_1 = arith.constant 0 : i32
    return %c0_i32, %c0_i32_0 : i32, i32
  }
  func.func @transform_6(%arg0: i32) -> (i32, i32) {
    %c0_i32 = arith.constant 0 : i32
    %c0_i32_0 = arith.constant 0 : i32
    %c0_i32_1 = arith.constant 0 : i32
    return %c0_i32, %c0_i32_0 : i32, i32
  }
  func.func @transform_7(%arg0: i32) -> (i32, i32) {
    %c0_i32 = arith.constant 0 : i32
    %c0_i32_0 = arith.constant 0 : i32
    %c0_i32_1 = arith.constant 0 : i32
    return %c0_i32, %c0_i32_0 : i32, i32
  }
  func.func @transform_8(%arg0: i32) -> (i32, i32) {
    %c0_i32 = arith.constant 0 : i32
    %c0_i32_0 = arith.constant 0 : i32
    %c0_i32_1 = arith.constant 0 : i32
    return %c0_i32, %c0_i32_0 : i32, i32
  }
  func.func @transform_9(%arg0: i32) -> (i32, i32) {
    %c0_i32 = arith.constant 0 : i32
    %c0_i32_0 = arith.constant 0 : i32
    return %arg0, %c0_i32 : i32, i32
  }
}

</mosaic_0001>

<bundles_post_ra>
// kernel: tpu_custom_call.1
= control target key start
LH: loop header
LB: loop body
LE: loop exit
PB: predicated region body
PF: predicated region fallthrough
CT: control target
= control target key end

     0   :  { %14 = vsyncpa [#allocation3], 0  ;;  %s1594_s0 = inlined_call_operand.vmem [shape: s32[64,2], index: 0, kind: input, shape index: {}]   ;;  %s1595_s1 = inlined_call_operand.vmem [shape: bf16[64,128], index: 1, kind: input, shape index: {}]   ;;  %s1596_s2 = inlined_call_operand.vmem [shape: bf16[128,128], index: 2, kind: input, shape index: {}]   ;;  %s1597_s3 = inlined_call_operand.vmem [shape: f32[1,128], index: 3, kind: input, shape index: {}]   ;;  %s1598_s4 = inlined_call_operand.vmem [shape: bf16[64,32], index: 4, kind: input, shape index: {}]   ;;  %s1599_s5 = inlined_call_operand.vmem [shape: bf16[32,128], index: 5, kind: input, shape index: {}]   ;;  %s1600_s6 = inlined_call_operand.vmem [shape: f32[1,128], index: 6, kind: input, shape index: {}]   ;;  %s1601_s7 = inlined_call_operand.hbm [shape: bf16[384,128], index: 7, kind: input, shape index: {}]   ;;  %s1602_s8 = inlined_call_operand.vmem [shape: f32[1,128], index: 8, kind: input, shape index: {}]   ;;  %s1603_s9 = inlined_call_operand.hbm [shape: f32[64,128], index: 9, kind: output, shape index: {}]  }
   0x1   :  { %15 = vsyncpa [#allocation4], 0  ;;  %s1306_s30 = smov [#allocation2]   ;;  %s1258_s13 = scalar_lea.hbm %s1601_s7, 3072 }
   0x2   :  { %s35_s10 = sshll.u32 %s1306_s30, 4  ;;  %p1259_p0 = scmp.ne.s32.totalorder %s1601_s7, %s1258_s13  ;;  %s36_s10 = int_to_ptr.vmem [resolvable:$true] %s35_s10 }
   0x3   :  { %p1262_p1 = scmp.lt.u32.totalorder %s1258_s13, %s1601_s7 }
   0x5   :  { %p1264_p2 = pnand %p1262_p1, %p1259_p0 }
   0x7   :  { %1267 = shalt.err (!%p1264_p2)
}
   0x8   :  { %s1268_s18 = scalar_lea.vmem %s36_s10, 3072  ;;  %p1273_p4 = scmp.lt.s32.totalorder %s36_s10, %s36_s10 }
   0x9   :  { %p1269_p3 = scmp.ne.s32.totalorder %s36_s10, %s1268_s18  ;;  %p1274_p5 = scmp.lt.s32.totalorder %s1268_s18, %s1268_s18 }
   0xb   :  { %p1275_p6 = por %p1274_p5, %p1273_p4 }
   0xd   :  { %p1276_p7 = pnand %p1275_p6, %p1269_p3 }
   0xf   :  { %1279 = shalt.err (!%p1276_p7)
}
  0x10   :  { %s1307_s19 = smov 64   ;;  %s1308_s20 = smov 4  }
  0x11   :  { %41 = dma.hbm_to_vmem [thread:$0]  %s1601_s7, 3072, %s36_s10, [#allocation3], %s1307_s19, %s1307_s19, %s1308_s20  }
  0x12   :  { %1302 = dma.done.wait [#allocation3], 3072  }
  0x13   :  { %1303 = vsyncadd [#allocation3], 4294964224  ;;  %v1309_v0 = vmov 1   ;;  %v1310_v1 = vmov 0   ;;  %v1152_v2 = vld [vmem:[%s1596_s2] sm:$0xff]   ;;  %v1153_v3 = vld [vmem:[%s1596_s2 + $0x8] sm:$0xff]  }
  0x14   :  { %1142 = vset.pattern.permute.xlu1 %v1309_v0  ;;  %1141 = vset.pattern.permute.xlu0 %v1310_v1  ;;  %v1155_v4 = vld [vmem:[%s1599_s5] sm:$0xff]   ;;  %v1154_v5 = vld [vmem:[%s1596_s2 + $0x10] sm:$0xff]   ;;  %v1157_v6 = vld [vmem:[%s1599_s5 + $0x8] sm:$0xff]   ;;  %vm429_vm0 = vcmask 261120  }
  0x15   :  { %1072 = vmatprep.subr.bf16.mxu0 %v1152_v2  ;;  %1096 = vmatprep.subr.bf16.mxu1 %v1155_v4  ;;  %v1159_v7 = vld [vmem:[%s1598_s4] sm:$0xff]   ;;  %v1156_v8 = vld [vmem:[%s1596_s2 + $0x18] sm:$0xff]   ;;  %v1160_v9 = vld [vmem:[%s1598_s4 + $0x8] sm:$0xff]  }
  0x16   :  { %1073 = vmatpush3.bf16.msra.mxu0 %v1152_v2  ;;  %1097 = vmatpush3.bf16.msra.mxu1 %v1155_v4  ;;  %v1163_v10 = vld [vmem:[%s1598_s4 + $0x10] sm:$0xff]   ;;  %v1158_v11 = vld [vmem:[%s1596_s2 + $0x20] sm:$0xff]   ;;  %v1161_v13 = vld [vmem:[%s1596_s2 + $0x28] sm:$0xff]  }
  0x17   :  { %1074 = vmatprep.subr.bf16.mxu0 %v1153_v3  ;;  %1098 = vmatprep.subr.bf16.mxu1 %v1157_v6  ;;  %v1166_v12 = vld [vmem:[%s1595_s1] sm:$0xff]   ;;  %v1164_v14 = vld [vmem:[%s1598_s4 + $0x18] sm:$0xff]   ;;  %v1162_v16 = vld [vmem:[%s1596_s2 + $0x30] sm:$0xff]  }
  0x18   :  { %1100 = vmatprep.mubr.msk.bf16.mxu1 %vm429_vm0, %v1159_v7  ;;  %1088 = vmatprep.mubr.bf16.mxu0 %v1166_v12  ;;  %v48_v15 = vld [vmem:[%s1594_s0] sm:$0xff]  ;;  %v49_v17 = vld [vmem:[%s1594_s0 + $0x8] sm:$0xff]  ;;  %v1165_v18 = vld [vmem:[%s1596_s2 + $0x38] sm:$0xff]  }
  0x19   :  { %91 = vperm.xlu1 %1142, %v48_v15   ;;  %59 = vperm.xlu0 %1141, %v48_v15   ;;  %v51_v19 = vld [vmem:[%s1594_s0 + $0x18] sm:$0xff]  ;;  %v50_v20 = vld [vmem:[%s1594_s0 + $0x10] sm:$0xff]  ;;  %v1167_v21 = vld [vmem:[%s1595_s1 + $0x8] sm:$0xff]  }
  0x1a   :  { %1075 = vmatpush3.bf16.msra.mxu0 %v1153_v3  ;;  %1099 = vmatpush3.bf16.msra.mxu1 %v1157_v6  ;;  %v1168_v22 = vld [vmem:[%s1595_s1 + $0x10] sm:$0xff]   ;;  %v52_v23 = vld [vmem:[%s1594_s0 + $0x20] sm:$0xff]  ;;  %v53_v24 = vld [vmem:[%s1594_s0 + $0x28] sm:$0xff] }
  0x1b   :  { %1076 = vmatprep.subr.bf16.mxu0 %v1154_v5  ;;  %v1169_v25 = vld [vmem:[%s1595_s1 + $0x18] sm:$0xff]   ;;  %v54_v26 = vld [vmem:[%s1594_s0 + $0x30] sm:$0xff]  ;;  %v1170_v28 = vld [vmem:[#allocation2 + $0x80] sm:$0xff]  }
  0x1c   :  { %v55_v27 = vld [vmem:[%s1594_s0 + $0x38] sm:$0xff]  ;;  %v1171_v29 = vld [vmem:[#allocation2 + $0x88] sm:$0xff]   ;;  %v1172_v30 = vld [vmem:[#allocation2 + $0x90] sm:$0xff]  }
  0x1d   :  { %1101 = vmatmul.mubr.msk.bf16.vlgmr.msra.gmra.mrb[0].mxu1 %vm429_vm0, %v1160_v9  ;;  %94 = vperm.xlu1 %1142, %v49_v17   ;;  %v1173_v31 = vld [vmem:[#allocation2 + $0x98] sm:$0xff]   ;;  %v1174_v32 = vld [vmem:[#allocation2 + $0x40] sm:$0xff]   ;;  %v1177_v35 = vld [vmem:[#allocation2 + $0x48] sm:$0xff]  }
  0x1e   :  { %1077 = vmatpush3.bf16.msra.mxu0 %v1154_v5  ;;  %1104 = vmatprep.mubr.msk.bf16.mxu1 %vm429_vm0, %v1163_v10  ;;  %v1175_v33 = vld [vmem:[#allocation2] sm:$0xff]   ;;  %v1178_v36 = vld [vmem:[#allocation2 + $0x8] sm:$0xff]   ;;  %v1180_v38 = vld [vmem:[#allocation2 + $0x50] sm:$0xff]  }
  0x1f   :  { %1078 = vmatprep.subr.bf16.mxu0 %v1156_v8  ;;  %62 = vperm.xlu0 %1141, %v49_v17   ;;  %v1176_v34 = vld [vmem:[#allocation2 + $0xa0] sm:$0xff]   ;;  %v1179_v37 = vld [vmem:[#allocation2 + $0xa8] sm:$0xff]   ;;  %v1181_v39 = vld [vmem:[#allocation2 + $0x10] sm:$0xff]  }
  0x20   :  { %1020 = vmatprep.subr.bf16.mxu1 %v1174_v32  ;;  %v1182_v40 = vld [vmem:[#allocation2 + $0xb0] sm:$0xff]   ;;  %v1183_v41 = vld [vmem:[#allocation2 + $0x58] sm:$0xff]   ;;  %v1186_v44 = vld [vmem:[#allocation2 + $0x60] sm:$0xff]  }
  0x21   :  { %1143 = vset.pattern.permute.xlu1 %v1310_v1  ;;  %1021 = vmatpush3.bf16.msra.mxu1 %v1175_v33  ;;  %v1184_v42 = vld [vmem:[#allocation2 + $0x18] sm:$0xff]   ;;  %v1187_v45 = vld [vmem:[#allocation2 + $0x20] sm:$0xff]   ;;  %v1188_v46 = vld [vmem:[#allocation2 + $0x68] sm:$0xff]  }
  0x22   :  { %1079 = vmatpush3.bf16.msra.mxu0 %v1156_v8  ;;  %68 = vperm.xlu1 %1143, %v51_v19   ;;  %v1185_v43 = vld [vmem:[#allocation2 + $0xb8] sm:$0xff]   ;;  %v1189_v47 = vld [vmem:[#allocation2 + $0x28] sm:$0xff]   ;;  %v1190_v48 = vld [vmem:[#allocation2 + $0x70] sm:$0xff]  }
  0x23   :  { %1080 = vmatprep.subr.bf16.mxu0 %v1158_v11  ;;  %1144 = vset.pattern.permute.xlu0 %v1309_v0  ;;  %v1191_v49 = vld [vmem:[#allocation2 + $0x30] sm:$0xff]   ;;  %v1192_v50 = vld [vmem:[#allocation2 + $0x78] sm:$0xff]   ;;  %v950_v52 = vld [vmem:[%s1600_s6] ss:$0 sm:$0xff] }
  0x24   :  { %97 = vperm.xlu0 %1144, %v50_v20   ;;  %1022 = vmatprep.subr.bf16.mxu1 %v1177_v35  ;;  %v1193_v51 = vld [vmem:[#allocation2 + $0x38] sm:$0xff]  }
  0x25   :  { %1105 = vmatmul.mubr.msk.bf16.gmra.mrb[4].mxu1 %vm429_vm0, %v1164_v14 }
  0x26   :  { %1081 = vmatpush3.bf16.msra.mxu0 %v1158_v11  ;;  %1146 = vset.pattern.permute.xlu1 %v1309_v0 }
  0x27   :  { %1082 = vmatprep.subr.bf16.mxu0 %v1161_v13  ;;  %100 = vperm.xlu1 %1146, %v51_v19  }
  0x28   :  { %1145 = vset.pattern.permute.xlu0 %v1310_v1  ;;  %1023 = vmatpush3.bf16.msra.mxu1 %v1178_v36 }
  0x29   :  { %65 = vperm.xlu0 %1145, %v50_v20   ;;  %1024 = vmatprep.subr.bf16.mxu1 %v1180_v38 }
  0x2a   :  { %1083 = vmatpush3.bf16.msra.mxu0 %v1161_v13 }
  0x2b   :  { %1084 = vmatprep.subr.bf16.mxu0 %v1162_v16  ;;  %1147 = vset.pattern.permute.xlu1 %v1310_v1 }
  0x2c   :  { %71 = vperm.xlu1 %1147, %v52_v23   ;;  %1025 = vmatpush3.bf16.msra.mxu1 %v1181_v39 }
  0x2d   :  { %74 = vperm.xlu0 %1145, %v53_v24   ;;  %1026 = vmatprep.subr.bf16.mxu1 %v1183_v41 }
  0x2e   :  { %1085 = vmatpush3.bf16.msra.mxu0 %v1162_v16 }
  0x2f   :  { %1086 = vmatprep.subr.bf16.mxu0 %v1165_v18 }
  0x30   :  { %1148 = vset.pattern.permute.xlu1 %v1309_v0  ;;  %1027 = vmatpush3.bf16.msra.mxu1 %v1184_v42 }
  0x31   :  { %103 = vperm.xlu1 %1148, %v52_v23   ;;  %77 = vperm.xlu0 %1145, %v54_v26  }
  0x32   :  { %1087 = vmatpush3.bf16.msra.mxu0 %v1165_v18  ;;  %1028 = vmatprep.subr.bf16.mxu1 %v1186_v44 }
  0x33   :  { %1108 = vmatprep.subr.bf16.mxu0 %v1170_v28 }
  0x34   :  { %1029 = vmatpush3.bf16.msra.mxu1 %v1187_v45 }
  0x35   :  { %1089 = vmatmul.mubr.bf16.vlgmr.msra.gmra.mrb[0].mxu0 %v1167_v21  ;;  %106 = vperm.xlu1 %1148, %v53_v24   ;;  %v929_v21 = vld [vmem:[%s1597_s3] ss:$0 sm:$0xff] }
  0x36   :  { %1092 = vmatprep.mubr.bf16.mxu0 %v1168_v22  ;;  %1150 = vset.pattern.permute.xlu0 %v1309_v0 }
  0x37   :  { %109 = vperm.xlu0 %1150, %v54_v26   ;;  %1109 = vmatpush3.bf16.msra.mxu0 %v1170_v28 }
  0x38   :  { %1110 = vmatprep.subr.bf16.mxu0 %v1171_v29  ;;  %1030 = vmatprep.subr.bf16.mxu1 %v1188_v46 }
  0x39   :  { %1149 = vset.pattern.permute.xlu1 %v1310_v1  ;;  %1031 = vmatpush3.bf16.msra.mxu1 %v1189_v47 }
  0x3a   :  { %80 = vperm.xlu1 %1149, %v55_v27   ;;  %1032 = vmatprep.subr.bf16.mxu1 %v1190_v48 }
  0x3b   :  { %1111 = vmatpush3.bf16.msra.mxu0 %v1171_v29 }
  0x3c   :  { %1112 = vmatprep.subr.bf16.mxu0 %v1172_v30 }
  0x3d   :  { %1093 = vmatmul.mubr.bf16.gmra.mrb[4].mxu0 %v1169_v25  ;;  %1033 = vmatpush3.bf16.msra.mxu1 %v1191_v49 }
  0x3e   :  { %1151 = vset.pattern.permute.xlu1 %v1309_v0  ;;  %1034 = vmatprep.subr.bf16.mxu1 %v1192_v50 }
  0x3f   :  { %112 = vperm.xlu1 %1151, %v55_v27   ;;  %1113 = vmatpush3.bf16.msra.mxu0 %v1172_v30 }
  0x40   :  { %1114 = vmatprep.subr.bf16.mxu0 %v1173_v31 }
  0x41   :  { %1035 = vmatpush3.bf16.msra.mxu1 %v1193_v51 }
  0x43   :  { %1115 = vmatpush3.bf16.msra.mxu0 %v1173_v31 }
  0x44   :  { %1116 = vmatprep.subr.bf16.mxu0 %v1176_v34 }
  0x47   :  { %1117 = vmatpush3.bf16.msra.mxu0 %v1176_v34 }
  0x48   :  { %1118 = vmatprep.subr.bf16.mxu0 %v1179_v37 }
  0x4b   :  { %1119 = vmatpush3.bf16.msra.mxu0 %v1179_v37 }
  0x4c   :  { %1120 = vmatprep.subr.bf16.mxu0 %v1182_v40 }
  0x4f   :  { %1121 = vmatpush3.bf16.msra.mxu0 %v1182_v40 }
  0x50   :  { %1122 = vmatprep.subr.bf16.mxu0 %v1185_v43 }
  0x53   :  { %1123 = vmatpush3.bf16.msra.mxu0 %v1185_v43 }
  0x98   :  { %v1511_v42 = vpop.permute.xlu1 %91 }
  0xf0   :  { %v1102_v53 = vpop.f32.mrb[0].mxu1 }
  0xf1   :  { %v1473_v54 = vadd.f32 %v1102_v53, %v950_v52  ;;  %v476_v55 = vpop.f32.mrb[1].mxu1 }
  0xf2   :  { %v1475_v56 = vadd.f32 %v950_v52, %v476_v55  ;;  %v1103_v57 = vpop.f32.mrb[2].mxu1 }
  0xf3   :  { %v963_v58 = vmul.f32 -1.442695, %v1473_v54  ;;  %v1478_v59 = vadd.f32 %v1103_v57, %v950_v52  ;;  %v479_v60 = vpop.f32.mrb[3].mxu1 }
  0xf4   :  { %v961_v61 = vmul.f32 -1.442695, %v1475_v56  ;;  %v1481_v62 = vadd.f32 %v950_v52, %v479_v60 }
  0xf5   :  { %1194 = vpow2.f32 %v963_v58  ;;  %v964_v63 = vmul.f32 -1.442695, %v1478_v59 }
  0xf6   :  { %1196 = vpow2.f32 %v961_v61  ;;  %v962_v0 = vmul.f32 -1.442695, %v1481_v62 }
  0xf7   :  { %1198 = vpow2.f32 %v964_v63 }
  0xf8   :  { %1200 = vpow2.f32 %v962_v0  ;;  %v1106_v1 = vpop.f32.mrb[4].mxu1  ;;  %v1529_v0 = vpop.permute.xlu1 %94 }
  0xf9   :  { %v1485_v2 = vadd.f32 %v1106_v1, %v950_v52  ;;  %v492_v3 = vpop.f32.mrb[5].mxu1 }
  0xfa   :  { %v1487_v4 = vadd.f32 %v950_v52, %v492_v3  ;;  %v1107_v5 = vpop.f32.mrb[6].mxu1 }
  0xfb   :  { %v967_v6 = vmul.f32 -1.442695, %v1485_v2  ;;  %v1490_v7 = vadd.f32 %v1107_v5, %v950_v52  ;;  %v495_v8 = vpop.f32.mrb[7].mxu1 }
  0xfc   :  { %v965_v9 = vmul.f32 -1.442695, %v1487_v4  ;;  %v1493_v10 = vadd.f32 %v950_v52, %v495_v8 }
  0xfd   :  { %1202 = vpow2.f32 %v967_v6  ;;  %v968_v11 = vmul.f32 -1.442695, %v1490_v7 }
  0xfe   :  { %1204 = vpow2.f32 %v965_v9  ;;  %v966_v12 = vmul.f32 -1.442695, %v1493_v10 }
  0xff   :  { %v1195_v13 = vpop.eup %1194  ;;  %1206 = vpow2.f32 %v968_v11 }
 0x100   :  { %v1197_v14 = vpop.eup %1196  ;;  %v533_v15 = vadd.f32 1.0, %v1195_v13  ;;  %1208 = vpow2.f32 %v966_v12  ;;  %v60_v13 = vpop.permute.xlu0 %59 }
 0x101   :  { %v1199_v16 = vpop.eup %1198  ;;  %v531_v17 = vadd.f32 1.0, %v1197_v14 }
 0x102   :  { %v1201_v18 = vpop.eup %1200  ;;  %1210 = vrcp.f32 %v533_v15  ;;  %v534_v19 = vadd.f32 1.0, %v1199_v16  ;;  %v1536_v16 = vpop.permute.xlu1 %68 }
 0x103   :  { %1212 = vrcp.f32 %v531_v17  ;;  %v532_v20 = vadd.f32 1.0, %v1201_v18 }
 0x104   :  { %1214 = vrcp.f32 %v534_v19 }
 0x105   :  { %1216 = vrcp.f32 %v532_v20 }
 0x107   :  { %v1203_v25 = vpop.eup %1202 }
 0x108   :  { %v1090_v22 = vpop.f32.mrb[0].mxu0  ;;  %v1205_v28 = vpop.eup %1204  ;;  %v537_v29 = vadd.f32 1.0, %v1203_v25 }
 0x109   :  { %v1500_v23 = vadd.f32 %v1090_v22, %v929_v21  ;;  %v287_v24 = vpop.f32.mrb[1].mxu0  ;;  %v1207_v32 = vpop.eup %1206  ;;  %v535_v33 = vadd.f32 1.0, %v1205_v28 }
 0x10a   :  { %v1502_v26 = vadd.f32 %v929_v21, %v287_v24  ;;  %v1091_v27 = vpop.f32.mrb[2].mxu0  ;;  %v1209_v35 = vpop.eup %1208  ;;  %1218 = vrcp.f32 %v537_v29  ;;  %v538_v36 = vadd.f32 1.0, %v1207_v32 }
 0x10b   :  { %v1504_v30 = vadd.f32 %v1091_v27, %v929_v21  ;;  %v290_v31 = vpop.f32.mrb[3].mxu0  ;;  %v944_v37 = vmul.f32 -1.442695, %v1500_v23  ;;  %1220 = vrcp.f32 %v535_v33  ;;  %v536_v38 = vadd.f32 1.0, %v1209_v35  ;;  %v63_v28 = vpop.permute.xlu0 %62 }
 0x10c   :  { %v1506_v34 = vadd.f32 %v929_v21, %v290_v31  ;;  %v942_v39 = vmul.f32 -1.442695, %v1502_v26  ;;  %v1211_v40 = vpop.eup %1210  ;;  %1222 = vrcp.f32 %v538_v36  ;;  %v56_v31 = vlaneseq  ;;  %v101_v32 = vpop.permute.xlu1 %100 }
 0x10d   :  { %v945_v41 = vmul.f32 -1.442695, %v1504_v30  ;;  %v1213_v43 = vpop.eup %1212  ;;  %v557_v44 = vmul.f32 %v1211_v40, %v1473_v54  ;;  %1224 = vrcp.f32 %v536_v38 }
 0x10e   :  { %v943_v45 = vmul.f32 -1.442695, %v1506_v34  ;;  %v1215_v47 = vpop.eup %1214  ;;  %v555_v48 = vmul.f32 %v1213_v43, %v1475_v56  ;;  %1226 = vpow2.f32 %v944_v37  ;;  %v1538_v37 = vand.u32 127, %v56_v31 }
 0x10f   :  { %v1217_v51 = vpop.eup %1216  ;;  %v558_v52 = vmul.f32 %v1215_v47, %v1478_v59  ;;  %1228 = vpow2.f32 %v942_v39  ;;  %v98_v38 = vpop.permute.xlu0 %97 }
 0x110   :  { %v1094_v46 = vpop.f32.mrb[4].mxu0  ;;  %v556_v54 = vmul.f32 %v1217_v51, %v1481_v62  ;;  %1230 = vpow2.f32 %v945_v41  ;;  %v72_v39 = vpop.permute.xlu1 %71  ;;  %vm114_vm1 = vcmp.eq.s32.totalorder %v1538_v37, %v1511_v42  ;;  %vm82_vm2 = vcmp.eq.s32.totalorder %v1538_v37, %v60_v13 }
 0x111   :  { %v1516_v49 = vadd.f32 %v1094_v46, %v929_v21  ;;  %v303_v50 = vpop.f32.mrb[5].mxu0  ;;  %v564_v56 = vpack.c.bf16 %v558_v52, %v557_v44  ;;  %1232 = vpow2.f32 %v943_v45  ;;  %vm115_vm3 = vcmp.eq.s32.totalorder %v1538_v37, %v1529_v0  ;;  %vm1550_vm5 = vmor %vm82_vm2, %vm114_vm1 }
 0x112   :  { %v1519_v53 = vadd.f32 %v929_v21, %v303_v50  ;;  %v1095_v55 = vpop.f32.mrb[6].mxu0  ;;  %v563_v1 = vpack.c.bf16 %v556_v54, %v555_v48  ;;  %vm83_vm4 = vcmp.eq.s32.totalorder %v1538_v37, %v63_v28  ;;  %vm85_vm8 = vcmp.eq.s32.totalorder %v1538_v37, %v1536_v16  ;;  %v969_v16 = vld [vmem:[%s1602_s8] ss:$0 sm:$0xff]  ;;  %s1312_s8 = smov [#allocation5]  }
 0x113   :  { %v948_v57 = vmul.f32 -1.442695, %v1516_v49  ;;  %v1523_v58 = vadd.f32 %v1095_v55, %v929_v21  ;;  %v306_v60 = vpop.f32.mrb[7].mxu0  ;;  %v66_v51 = vpop.permute.xlu0 %65  ;;  %vm1554_vm6 = vmor %vm83_vm4, %vm115_vm3  ;;  %vm117_vm9 = vcmp.eq.s32.totalorder %v1538_v37, %v101_v32  ;;  %vm116_vm10 = vcmp.eq.s32.totalorder %v1538_v37, %v98_v38  ;;  %s909_s28 = sshll.u32 %s1312_s8, 4  ;;  %s910_s28 = int_to_ptr.vmem [resolvable:$true] %s909_s28 }
 0x114   :  { %v946_v61 = vmul.f32 -1.442695, %v1519_v53  ;;  %v1526_v63 = vadd.f32 %v929_v21, %v306_v60  ;;  %v1219_v3 = vpop.eup %1218  ;;  %1124 = vmatprep.mubr.bf16.mxu0 %v563_v1  ;;  %v104_v54 = vpop.permute.xlu1 %103  ;;  %vm994_vm7 = vmpackc.low %vm1554_vm6, %vm1550_vm5  ;;  %vm84_vm11 = vcmp.eq.s32.totalorder %v1538_v37, %v66_v51  ;;  %vm86_vm15 = vcmp.eq.s32.totalorder %v1538_v37, %v72_v39  ;;  %s1280_s29 = scalar_lea.vmem %s910_s28, 1024  ;;  %p1285_p9 = scmp.lt.s32.totalorder %s910_s28, %s910_s28 }
 0x115   :  { %1234 = vpow2.f32 %v948_v57  ;;  %v949_v59 = vmul.f32 -1.442695, %v1523_v58  ;;  %v1221_v5 = vpop.eup %1220  ;;  %v561_v6 = vmul.f32 %v1219_v3, %v1485_v2  ;;  %1125 = vmatmul.mubr.bf16.vlgmr.msra.gmra.mrb[8].mxu0 %v564_v56  ;;  %vm125_vm12 = vmor %vm85_vm8, %vm117_vm9  ;;  %vm118_vm0 = vcmp.eq.s32.totalorder %v1538_v37, %v104_v54  ;;  %p1281_p8 = scmp.ne.s32.totalorder %s910_s28, %s1280_s29  ;;  %p1286_p10 = scmp.lt.s32.totalorder %s1280_s29, %s1280_s29 }
 0x116   :  { %1236 = vpow2.f32 %v946_v61  ;;  %v947_v62 = vmul.f32 -1.442695, %v1526_v63  ;;  %v1223_v8 = vpop.eup %1222  ;;  %v559_v9 = vmul.f32 %v1221_v5, %v1487_v4  ;;  %vm124_vm13 = vmor %vm84_vm11, %vm116_vm10 }
 0x117   :  { %1238 = vpow2.f32 %v949_v59  ;;  %v1225_v11 = vpop.eup %1224  ;;  %v562_v12 = vmul.f32 %v1223_v8, %v1490_v7  ;;  %v1311_v59 = vmov 1.0|1.0   ;;  %vm996_vm14 = vmpackc.low %vm125_vm12, %vm124_vm13  ;;  %p1287_p11 = por %p1286_p10, %p1285_p9 }
 0x118   :  { %1240 = vpow2.f32 %v947_v62  ;;  %v1227_v14 = vpop.eup %1226  ;;  %v560_v15 = vmul.f32 %v1225_v11, %v1493_v10  ;;  %vm126_vm3 = vmor %vm86_vm15, %vm118_vm0 }
 0x119   :  { %v1229_v17 = vpop.eup %1228  ;;  %v344_v18 = vadd.f32 1.0, %v1227_v14  ;;  %v566_v19 = vpack.c.bf16 %v562_v12, %v561_v6  ;;  %p1288_p12 = pnand %p1287_p11, %p1281_p8 }
 0x11a   :  { %v1231_v20 = vpop.eup %1230  ;;  %v342_v21 = vadd.f32 1.0, %v1229_v17  ;;  %v565_v2 = vpack.c.bf16 %v560_v15, %v559_v9 }
 0x11b   :  { %v1233_v22 = vpop.eup %1232  ;;  %1242 = vrcp.f32 %v344_v18  ;;  %v345_v24 = vadd.f32 1.0, %v1231_v20 }
 0x11c   :  { %1244 = vrcp.f32 %v342_v21  ;;  %v343_v4 = vadd.f32 1.0, %v1233_v22  ;;  %1128 = vmatprep.mubr.bf16.mxu0 %v565_v2 }
 0x11d   :  { %1246 = vrcp.f32 %v345_v24  ;;  %1129 = vmatmul.mubr.bf16.gmra.mrb[12].mxu0 %v566_v19 }
 0x11e   :  { %1248 = vrcp.f32 %v343_v4 }
 0x11f   :  { %v1235_v25 = vpop.eup %1234 }
 0x120   :  { %v1237_v7 = vpop.eup %1236  ;;  %v348_v27 = vadd.f32 1.0, %v1235_v25 }
 0x121   :  { %v1239_v10 = vpop.eup %1238  ;;  %v346_v29 = vadd.f32 1.0, %v1237_v7 }
 0x122   :  { %v1241_v33 = vpop.eup %1240  ;;  %1250 = vrcp.f32 %v348_v27  ;;  %v349_v35 = vadd.f32 1.0, %v1239_v10 }
 0x123   :  { %1252 = vrcp.f32 %v346_v29  ;;  %v347_v36 = vadd.f32 1.0, %v1241_v33 }
 0x124   :  { %1254 = vrcp.f32 %v349_v35 }
 0x125   :  { %1256 = vrcp.f32 %v347_v36  ;;  %v1243_v40 = vpop.eup %1242 }
 0x126   :  { %v1245_v41 = vpop.eup %1244  ;;  %v368_v45 = vmul.f32 %v1243_v40, %v1500_v23 }
 0x127   :  { %v1247_v43 = vpop.eup %1246  ;;  %v366_v48 = vmul.f32 %v1245_v41, %v1502_v26 }
 0x128   :  { %v1249_v44 = vpop.eup %1248  ;;  %v369_v46 = vmul.f32 %v1247_v43, %v1504_v30 }
 0x129   :  { %v367_v50 = vmul.f32 %v1249_v44, %v1506_v34 }
 0x12a   :  { %v375_v57 = vpack.c.bf16 %v369_v46, %v368_v45 }
 0x12b   :  { %v374_v60 = vpack.c.bf16 %v367_v50, %v366_v48 }
 0x12c   :  { %v1251_v47 = vpop.eup %1250 }
 0x12d   :  { %v1253_v52 = vpop.eup %1252  ;;  %v372_v56 = vmul.f32 %v1251_v47, %v1516_v49  ;;  %798 = vmatprep.mubr.bf16.mxu1 %v374_v60 }
 0x12e   :  { %v1255_v23 = vpop.eup %1254  ;;  %v370_v34 = vmul.f32 %v1253_v52, %v1519_v53  ;;  %995 = vmatmul.mubr.msk.bf16.vlgmr.msra.gmra.mrb[8].mxu1 %vm994_vm7, %v1311_v59  ;;  %v75_v53 = vpop.permute.xlu0 %74 }
 0x12f   :  { %v1257_v30 = vpop.eup %1256  ;;  %v373_v26 = vmul.f32 %v1255_v23, %v1523_v58  ;;  %806 = vmatprep.mubr.bf16.mxu1 %v375_v57  ;;  %vm87_vm2 = vcmp.eq.s32.totalorder %v1538_v37, %v75_v53 }
 0x130   :  { %v371_v61 = vmul.f32 %v1257_v30, %v1526_v63  ;;  %v107_v63 = vpop.permute.xlu1 %106 }
 0x131   :  { %v377_v49 = vpack.c.bf16 %v373_v26, %v372_v56  ;;  %vm119_vm1 = vcmp.eq.s32.totalorder %v1538_v37, %v107_v63 }
 0x132   :  { %v376_v58 = vpack.c.bf16 %v371_v61, %v370_v34  ;;  %v78_v0 = vpop.permute.xlu0 %77  ;;  %vm127_vm4 = vmor %vm87_vm2, %vm119_vm1 }
 0x133   :  { %vm998_vm5 = vmpackc.low %vm127_vm4, %vm126_vm3  ;;  %vm88_vm6 = vcmp.eq.s32.totalorder %v1538_v37, %v78_v0 }
 0x134   :  { %v81_v1 = vpop.permute.xlu1 %80 }
 0x135   :  { %vm89_vm8 = vcmp.eq.s32.totalorder %v1538_v37, %v81_v1 }
 0x136   :  { %997 = vmatmul.mubr.msk.bf16.gmra.mrb[12].mxu1 %vm996_vm14, %v1311_v59  ;;  %v110_v62 = vpop.permute.xlu0 %109 }
 0x137   :  { %814 = vmatprep.mubr.bf16.mxu1 %v376_v58  ;;  %vm120_vm7 = vcmp.eq.s32.totalorder %v1538_v37, %v110_v62 }
 0x138   :  { %v113_v3 = vpop.permute.xlu1 %112  ;;  %vm128_vm10 = vmor %vm88_vm6, %vm120_vm7 }
 0x139   :  { %vm121_vm9 = vcmp.eq.s32.totalorder %v1538_v37, %v113_v3 }
 0x13a   :  { %vm129_vm11 = vmor %vm89_vm8, %vm121_vm9 }
 0x13b   :  { %vm1000_vm12 = vmpackc.low %vm129_vm11, %vm128_vm10 }
 0x13e   :  { %999 = vmatmul.mubr.msk.bf16.gmra.mrb[16].mxu1 %vm998_vm5, %v1311_v59 }
 0x13f   :  { %822 = vmatprep.mubr.bf16.mxu1 %v377_v49 }
 0x146   :  { %1001 = vmatmul.mubr.msk.bf16.gmra.mrb[20].mxu1 %vm1000_vm12, %v1311_v59 }
 0x1e8   :  { %v1126_v5 = vpop.f32.mrb[8].mxu0 }
 0x1e9   :  { %v865_v6 = vpop.f32.mrb[9].mxu0 }
 0x1ea   :  { %v1127_v8 = vpop.f32.mrb[10].mxu0 }
 0x1eb   :  { %v868_v9 = vpop.f32.mrb[11].mxu0 }
 0x1f0   :  { %v1130_v11 = vpop.f32.mrb[12].mxu0 }
 0x1f1   :  { %v881_v12 = vpop.f32.mrb[13].mxu0 }
 0x1f2   :  { %v1131_v13 = vpop.f32.mrb[14].mxu0 }
 0x1f3   :  { %v884_v14 = vpop.f32.mrb[15].mxu0 }
 0x201   :  { %v1036_v15 = vpop.f32.mrb[8].mxu1 }
 0x202   :  { %v1037_v17 = vpop.f32.mrb[9].mxu1 }
 0x203   :  { %v1038_v18 = vadd.f32 %v1037_v17, %v1036_v15  ;;  %v1039_v19 = vpop.f32.mrb[10].mxu1 }
 0x204   :  { %v1040_v20 = vpop.f32.mrb[11].mxu1 }
 0x205   :  { %v801_v21 = vadd.f32 %v1038_v18, %v969_v16  ;;  %v1041_v2 = vadd.f32 %v1040_v20, %v1039_v19 }
 0x207   :  { %v866_v22 = vadd.f32 %v865_v6, %v801_v21  ;;  %v804_v24 = vadd.f32 %v1041_v2, %v969_v16 }
 0x209   :  { %896 = vst [vmem:[#allocation5] sm:$0xff] %v866_v22  ;;  %v869_v25 = vadd.f32 %v868_v9, %v804_v24  ;;  %v1042_v4 = vpop.f32.mrb[12].mxu1 }
 0x20a   :  { %v1043_v7 = vpop.f32.mrb[13].mxu1 }
 0x20b   :  { %897 = vst [vmem:[#allocation5 + $0x8] sm:$0xff] %v869_v25  ;;  %v1044_v27 = vadd.f32 %v1043_v7, %v1042_v4  ;;  %v1045_v28 = vpop.f32.mrb[14].mxu1 }
 0x20c   :  { %v1046_v10 = vpop.f32.mrb[15].mxu1 }
 0x20d   :  { %v809_v29 = vadd.f32 %v1044_v27, %v969_v16  ;;  %v1047_v31 = vadd.f32 %v1046_v10, %v1045_v28 }
 0x20f   :  { %v874_v32 = vadd.f32 %v1126_v5, %v809_v29  ;;  %v812_v33 = vadd.f32 %v1047_v31, %v969_v16 }
 0x211   :  { %898 = vst [vmem:[#allocation5 + $0x10] sm:$0xff] %v874_v32  ;;  %v877_v35 = vadd.f32 %v1127_v8, %v812_v33  ;;  %v1048_v36 = vpop.f32.mrb[16].mxu1 }
 0x212   :  { %v1049_v37 = vpop.f32.mrb[17].mxu1 }
 0x213   :  { %899 = vst [vmem:[#allocation5 + $0x18] sm:$0xff] %v877_v35  ;;  %v1050_v38 = vadd.f32 %v1049_v37, %v1048_v36  ;;  %v1051_v39 = vpop.f32.mrb[18].mxu1 }
 0x214   :  { %v1052_v40 = vpop.f32.mrb[19].mxu1 }
 0x215   :  { %v817_v41 = vadd.f32 %v1050_v38, %v969_v16  ;;  %v1053_v43 = vadd.f32 %v1052_v40, %v1051_v39 }
 0x217   :  { %v882_v44 = vadd.f32 %v881_v12, %v817_v41  ;;  %v820_v45 = vadd.f32 %v1053_v43, %v969_v16 }
 0x219   :  { %900 = vst [vmem:[#allocation5 + $0x20] sm:$0xff] %v882_v44  ;;  %v885_v46 = vadd.f32 %v884_v14, %v820_v45  ;;  %v1054_v47 = vpop.f32.mrb[20].mxu1 }
 0x21a   :  { %v1055_v48 = vpop.f32.mrb[21].mxu1 }
 0x21b   :  { %901 = vst [vmem:[#allocation5 + $0x28] sm:$0xff] %v885_v46  ;;  %v1056_v50 = vadd.f32 %v1055_v48, %v1054_v47  ;;  %v1057_v42 = vpop.f32.mrb[22].mxu1 }
 0x21c   :  { %v1058_v51 = vpop.f32.mrb[23].mxu1 }
 0x21d   :  { %v825_v52 = vadd.f32 %v1056_v50, %v969_v16  ;;  %v1059_v55 = vadd.f32 %v1058_v51, %v1057_v42 }
 0x21f   :  { %v890_v54 = vadd.f32 %v1130_v11, %v825_v52  ;;  %v828_v57 = vadd.f32 %v1059_v55, %v969_v16 }
 0x221   :  { %902 = vst [vmem:[#allocation5 + $0x30] sm:$0xff] %v890_v54  ;;  %v893_v23 = vadd.f32 %v1131_v13, %v828_v57 }
 0x223   :  { %903 = vst [vmem:[#allocation5 + $0x38] sm:$0xff] %v893_v23 }
 0x224   :  { %1291 = shalt.err (!%p1288_p12)
}
 0x225   :  { %s1292_s4 = scalar_lea.hbm %s1603_s9, 1024 }
 0x226   :  { %p1293_p13 = scmp.ne.s32.totalorder %s1603_s9, %s1292_s4  ;;  %p1296_p0 = scmp.lt.u32.totalorder %s1292_s4, %s1603_s9 }
 0x228   :  { %p1298_p1 = pnand %p1296_p0, %p1293_p13 }
 0x22a   :  { %1301 = shalt.err (!%p1298_p1)
}
 0x22b   :  { %s1313_s15 = smov 128   ;;  %s1314_s16 = smov 8  }
 0x22c   :  { %915 = dma.vmem_to_hbm [thread:$0]  %s910_s28, 1024, %s1603_s9, [#allocation4], %s1313_s15, %s1313_s15, %s1314_s16  }
 0x22d   :  { %1304 = dma.done.wait [#allocation4], 1024  }
 0x22e   :  { %1305 = vsyncadd [#allocation4], 4294966272 }
 0x22f   :  { %919 = vsyncpa [#allocation3], 1 }
 0x230   :  { %920 = vsyncpa [#allocation4], 1 }

</bundles_post_ra>
